<compile_context>
chip_gen: v7x
topology: tpu7x:2x2x1
jax: 0.10.0
libtpu: 0.0.40
codegen_flags: <defaults>
</compile_context>

<pallas_src>
import random

import jax
import jax.numpy as jnp
from jax.experimental import pallas as pl
from jax.experimental.pallas import tpu as pltpu


# --------------------------------------------------------------------------
# Kernel
# --------------------------------------------------------------------------
def _translate_kernel(shift_ref, mask_ref, x_ref, o_ref):
    """Shift flattened (H*W) planes by a precomputed flat offset, zero fill.

    shift_ref : SMEM (1,) int32   -- dy*W + dx (scalar prefetch)
    mask_ref  : VMEM (1, H*W)     -- keep-mask in the data dtype (1 = keep)
    x_ref     : VMEM (tile_p, H*W)
    o_ref     : VMEM (tile_p, H*W)
    """
    rolled = pltpu.roll(x_ref[...], shift=shift_ref[0], axis=1)
    keep = mask_ref[...] != 0                      # (1, H*W), broadcasts over rows
    o_ref[...] = jnp.where(keep, rolled, jnp.zeros_like(rolled))


# --------------------------------------------------------------------------
# Tiling heuristics
# --------------------------------------------------------------------------
def _sublane_pack(dtype) -> int:
    """Sublane packing multiple for the dtype (f32: 8, bf16: 16, int8/fp8: 32)."""
    return {4: 8, 2: 16, 1: 32}.get(jnp.dtype(dtype).itemsize, 8)


def _target_block_bytes() -> int:
    """Per-block byte budget by TPU generation.

    v6e (32 MiB scoped-VMEM default, 128 MiB physical) -> ~4 MiB blocks.
    v5e (16 MiB scoped default) and v7x (64 MiB VMEM total; pipeline depth
    beats block size at 3.2 TB/s) -> ~2 MiB blocks.
    """
    try:
        kind = jax.devices()[0].device_kind.lower()
    except Exception:  # pragma: no cover - defensive
        kind = ""
    return (4 << 20) if "v6" in kind else (2 << 20)


def _choose_tile_p(P: int, HW: int, dtype, min_steps: int = 4) -> int:
    """Rows-per-block: multiple of the sublane pack, <= byte budget, and
    small enough to give >= min_steps grid steps (>= 2 per v7x TensorCore)
    whenever P permits, so DMA writeback overlaps the next prefetch."""
    pack = _sublane_pack(dtype)
    if P <= pack:
        return P
    row_bytes = HW * jnp.dtype(dtype).itemsize
    target = _target_block_bytes()
    # Largest pack-multiple block under the per-block byte budget.
    cap = max(pack, (target // max(1, row_bytes)) // pack * pack)
    # Largest pack-multiple block that still yields >= min_steps grid steps.
    per_step = max(pack, (P // min_steps) // pack * pack)
    return min(cap, per_step)


# --------------------------------------------------------------------------
# Wrapper (compiled once per shape/dtype; dy/dx are runtime scalars)
# --------------------------------------------------------------------------
@jax.jit
def translate_image(x: jax.Array, dy, dx) -> jax.Array:
    """out[n,c,y,x] = x[n,c,y-dy,x-dx] if in-bounds else 0, for dy, dx >= 0.

    dy >= H or dx >= W yields an all-zero image (consistent with zero fill).
    Negative shifts are not supported (cannot occur with positive ratios).
    """
    N, C, H, W = x.shape
    P, HW = N * C, H * W
    x_flat = x.reshape(P, HW)

    dy = jnp.asarray(dy, jnp.int32)
    dx = jnp.asarray(dx, jnp.int32)
    shift = (dy * W + dx).reshape(1)

    # Hoisted keep-mask: one (1, H*W) row in the data's packed dtype.
    flat = jnp.arange(HW, dtype=jnp.int32)
    keep = ((flat >= dy * W) & ((flat % W) >= dx)).astype(x.dtype).reshape(1, HW)

    tile_p = _choose_tile_p(P, HW, x.dtype)
    nbytes = P * HW * jnp.dtype(x.dtype).itemsize

    out_flat = pl.pallas_call(
        _translate_kernel,
        out_shape=jax.ShapeDtypeStruct((P, HW), x.dtype),
        grid_spec=pltpu.PrefetchScalarGridSpec(
            num_scalar_prefetch=1,
            grid=(pl.cdiv(P, tile_p),),
            in_specs=[
                # Mask: same block every step -> fetched once, stays resident.
                pl.BlockSpec((1, HW), lambda i, s: (0, 0)),
                pl.BlockSpec((tile_p, HW), lambda i, s: (i, 0)),
            ],
            out_specs=pl.BlockSpec((tile_p, HW), lambda i, s: (i, 0)),
        ),
        compiler_params=pltpu.CompilerParams(
            dimension_semantics=("parallel",),
        ),
        cost_estimate=pl.CostEstimate(
            flops=0, transcendentals=0, bytes_accessed=2 * nbytes),
    )(shift, keep, x_flat)
    return out_flat.reshape(N, C, H, W)


# --------------------------------------------------------------------------
# Noise layer (host-side RNG, mirrors the PyTorch module)
# --------------------------------------------------------------------------
class Translate:
    """JAX/Pallas port of the PyTorch Translate noise layer."""

    def __init__(self, min_translate_ratio=0.05, max_translate_ratio=0.5, seed=0):
        self.min_translate_ratio = min_translate_ratio
        self.max_translate_ratio = max_translate_ratio
        self._rng = random.Random(seed)

    def __call__(self, noised_and_cover):
        noised = noised_and_cover[0]
        ratio = self._rng.uniform(self.min_translate_ratio, self.max_translate_ratio)
        dy = int(noised.shape[2] * ratio)
        dx = int(noised.shape[3] * ratio)
        noised_and_cover[0] = translate_image(noised, dy, dx)
        return noised_and_cover

    def __repr__(self):
        return (f"Translate(min_translate_ratio={self.min_translate_ratio}, "
                f"max_translate_ratio={self.max_translate_ratio})")


# --------------------------------------------------------------------------
# Reference & self-tests
# --------------------------------------------------------------------------
def _reference_translate(x, dy, dx):
    """Pure-JAX reference: zero-fill integer shift down by dy, right by dx."""
    N, C, H, W = x.shape
    padded = jnp.pad(x, ((0, 0), (0, 0), (dy, 0), (dx, 0)))
    return padded[:, :, :H, :W]


if __name__ == "__main__":
    key = jax.random.PRNGKey(0)
    k1, k2, k3 = jax.random.split(key, 3)

    N, C, H, W = 2, 4, 16, 16
    noised = jax.random.normal(k1, (N, C, H, W), dtype=jnp.float32)
    cover = jax.random.normal(k2, (N, C, H, W), dtype=jnp.float32)

    # Direct kernel checks: same compiled kernel reused for every (dy, dx).
    for dy_t, dx_t in [(0, 0), (3, 5), (7, 1)]:
        got = jax.block_until_ready(translate_image(noised, dy_t, dx_t))
        want = _reference_translate(noised, dy_t, dx_t)
        assert jnp.array_equal(got, want), f"mismatch at dy={dy_t}, dx={dx_t}"

    # Multi-block grid path (P=64 -> 4 grid steps for f32), fp32 and bf16.
    x_big = jax.random.normal(k3, (4, 16, 16, 16), dtype=jnp.float32)
    got_big = jax.block_until_ready(translate_image(x_big, 5, 3))
    assert jnp.array_equal(got_big, _reference_translate(x_big, 5, 3))

    x_bf16 = x_big.astype(jnp.bfloat16)
    got_bf16 = jax.block_until_ready(translate_image(x_bf16, 4, 6))
    assert jnp.array_equal(got_bf16, _reference_translate(x_bf16, 4, 6))

    # Non-power-of-two width (exercises the rem-based mask construction).
    x2 = jax.random.normal(k2, (1, 3, 16, 24), dtype=jnp.float32)
    got2 = jax.block_until_ready(translate_image(x2, 2, 5))
    assert jnp.array_equal(got2, _reference_translate(x2, 2, 5))

    # Full layer (host-side RNG draw, mirroring the PyTorch module).
    layer = Translate(seed=0)
    ratio_check = random.Random(0).uniform(layer.min_translate_ratio,
                                           layer.max_translate_ratio)
    dy_check = int(H * ratio_check)
    dx_check = int(W * ratio_check)

    out = layer([noised, cover])
    translated = jax.block_until_ready(out[0])

    expected = _reference_translate(noised, dy_check, dx_check)
    assert translated.shape == (N, C, H, W)
    assert translated.dtype == noised.dtype
    assert jnp.array_equal(translated, expected), "mismatch vs reference"
    assert jnp.array_equal(out[1], cover), "cover image must pass through unchanged"

    print("KERNEL_OK")
</pallas_src>

<mosaic_0001>
module attributes {stable_mosaic.version = 11 : i64} {
  func.func @_translate_kernel(%arg0: i32, %arg1: memref<1xi32, #tpu.memory_space<smem>>, %arg2: memref<1x256xf32, #tpu.memory_space<vmem>>, %arg3: memref<8x256xf32, #tpu.memory_space<vmem>>, %arg4: memref<8x256xf32, #tpu.memory_space<vmem>>) attributes {dimension_semantics = [#tpu.dimension_semantics<parallel>], iteration_bounds = array<i64: 1>, scalar_prefetch = 1 : i64, scratch_operands = 0 : i64, tpu.core_type = #tpu.core_type<tc>, window_params = [{pipeline_mode = #tpu.pipeline_mode<synchronous>, transform_indices = @transform_0, window_bounds = array<i64: 1, 256>}, {transform_indices = @transform_1, window_bounds = array<i64: 8, 256>}, {transform_indices = @transform_2, window_bounds = array<i64: 8, 256>}]} {
    %c0 = arith.constant 0 : index
    %c0_0 = arith.constant 0 : index
    %0 = vector.load %arg3[%c0, %c0_0] : memref<8x256xf32, #tpu.memory_space<vmem>>, vector<8x256xf32>
    %c0_1 = arith.constant 0 : index
    %1 = memref.load %arg1[%c0_1] : memref<1xi32, #tpu.memory_space<smem>>
    %2 = tpu.dynamic_rotate %0 by %1 dim 1 : vector<8x256xf32>, i32 -> vector<8x256xf32>
    %c0_2 = arith.constant 0 : index
    %c0_3 = arith.constant 0 : index
    %3 = vector.load %arg2[%c0_2, %c0_3] : memref<1x256xf32, #tpu.memory_space<vmem>>, vector<1x256xf32>
    %cst = arith.constant 0.000000e+00 : f32
    %4 = vector.broadcast %cst : f32 to vector<1x256xf32>
    %5 = arith.cmpf one, %3, %4 : vector<1x256xf32>
    %cst_4 = arith.constant 0.000000e+00 : f32
    %6 = vector.broadcast %cst_4 : f32 to vector<8x256xf32>
    %7 = vector.shape_cast %5 : vector<1x256xi1> to vector<1x256xi1>
    %8 = vector.broadcast %7 : vector<1x256xi1> to vector<8x256xi1>
    %9 = arith.select %8, %2, %6 : vector<8x256xi1>, vector<8x256xf32>
    %c0_5 = arith.constant 0 : index
    %c0_6 = arith.constant 0 : index
    %10 = vector.load %arg4[%c0_5, %c0_6] : memref<8x256xf32, #tpu.memory_space<vmem>>, vector<8x256xf32>
    tpu.vector_store %arg4[%c0_5, %c0_6], %9 {strides = array<i32>} : memref<8x256xf32, #tpu.memory_space<vmem>>, vector<8x256xf32>,
    return
  }
  func.func @transform_0(%arg0: i32, %arg1: memref<1xi32, #tpu.memory_space<smem>>) -> (i32, i32) {
    %c0_i32 = arith.constant 0 : i32
    %c0_i32_0 = arith.constant 0 : i32
    %c0_i32_1 = arith.constant 0 : i32
    return %c0_i32, %c0_i32_0 : i32, i32
  }
  func.func @transform_1(%arg0: i32, %arg1: memref<1xi32, #tpu.memory_space<smem>>) -> (i32, i32) {
    %c0_i32 = arith.constant 0 : i32
    %c0_i32_0 = arith.constant 0 : i32
    return %arg0, %c0_i32 : i32, i32
  }
  func.func @transform_2(%arg0: i32, %arg1: memref<1xi32, #tpu.memory_space<smem>>) -> (i32, i32) {
    %c0_i32 = arith.constant 0 : i32
    %c0_i32_0 = arith.constant 0 : i32
    return %arg0, %c0_i32 : i32, i32
  }
}

</mosaic_0001>

<bundles_post_ra>
// kernel: translate_image.1
= control target key start
LH: loop header
LB: loop body
LE: loop exit
PB: predicated region body
PF: predicated region fallthrough
CT: control target
= control target key end

     0   :  { %v24_v2 = vlaneseq  ;;  %v56_v7 = vmov 0   ;;  %s95_s0 = inlined_call_operand.<no memory space> [shape: s32[1], index: 0, kind: input, shape index: {}]   ;;  %s96_s2 = inlined_call_operand.vmem [shape: f32[8,256], index: 2, kind: input, shape index: {}]   ;;  %s97_s1 = inlined_call_operand.vmem [shape: f32[1,256], index: 1, kind: input, shape index: {}]   ;;  %s98_s3 = inlined_call_operand.vmem [shape: f32[8,256], index: 3, kind: output, shape index: {}]  }
   0x1   :  { %v13_v0 = vld [vmem:[%s96_s2] sm:$0xff]  ;;  %s16_s16 = sand.u32 255, %s95_s0   ;;  %v14_v1 = vld [vmem:[%s96_s2 + $0x8] sm:$0xff] }
   0x2   :  { %s17_s17 = sand.u32 127, %s16_s16   ;;  %v34_v3 = vld [vmem:[%s97_s1] sm:$0x3]  ;;  %v38_v4 = vshrl.u32 %v24_v2, 7  ;;  %s18_s22 = sshrl.u32 %s16_s16, 7  ;;  %v25_v9 = vand.u32 127, %v24_v2 }
   0x3   :  { %19 = vrot.lane.b32.xlu0 %v13_v0, %s17_s17  ;;  %vm35_vm0 = vcmp.ne.f32.partialorder %v34_v3, 0.0  ;;  %s29_s23 = sand.u32 1, %s18_s22  ;;  %v23_v10 = vstv %s17_s17 }
   0x4   :  { %v39_v5 = vsub.s32 0, %v38_v4  ;;  %v43_v6 = vsub.s32 1, %v38_v4  ;;  %v36_v8 = vsel %vm35_vm0, 1, %v56_v7  ;;  %v30_v11 = vstv %s29_s23 }
   0x5   :  { %vm26_vm1 = vcmp.lt.s32.totalorder %v25_v9, %v23_v10  ;;  %vm31_vm2 = vcmp.ne.s32.totalorder %v30_v11, 0 }
   0x6   :  { %v40_v13 = vrot.slane %v36_v8, %v39_v5  ;;  %v44_v14 = vrot.slane %v36_v8, %v43_v6 }
   0x7   :  { %21 = vrot.lane.b32.xlu0 %v14_v1, %s17_s17 }
   0x8   :  { %vm45_vm3 = vcmp.eq.s32.totalorder %v40_v13, 1  ;;  %vm46_vm4 = vcmp.eq.s32.totalorder %v44_v14, 1 }
  0x75   :  { %v20_v12 = vpop.permute.xlu0 %19 }
  0x79   :  { %v22_v15 = vpop.permute.xlu0 %21 }
  0x7a   :  { %v27_v16 = vsel %vm26_vm1, %v20_v12, %v22_v15  ;;  %v28_v17 = vsel %vm26_vm1, %v22_v15, %v20_v12 }
  0x7b   :  { %v32_v18 = vsel %vm31_vm2, %v27_v16, %v28_v17  ;;  %v33_v19 = vsel %vm31_vm2, %v28_v17, %v27_v16 }
  0x7c   :  { %v47_v20 = vsel %vm45_vm3, %v32_v18, 0.0  ;;  %v48_v21 = vsel %vm46_vm4, %v33_v19, 0.0 }
  0x7d   :  { %49 = vst [vmem:[%s98_s3] sm:$0xff] %v47_v20  ;;  %50 = vst [vmem:[%s98_s3 + $0x8] sm:$0xff] %v48_v21 }

</bundles_post_ra>
